<compile_context>
chip_gen: v7x
topology: tpu7x:2x2x1
jax: 0.10.0
libtpu: 0.0.40
codegen_flags: <defaults>
</compile_context>

<pallas_src>
import math

import jax
import jax.numpy as jnp
from jax.experimental import pallas as pl
from jax.experimental.pallas import tpu as pltpu


def _mlp_kernel(x_ref, w1_ref, b1_ref, w2_ref, b2_ref, o_ref):
    """One grid step processes TM rows of the flattened (B*N, D_in) input.

    x_ref  : (TM, D_in)   input rows for this tile
    w1_ref : (D_in, H)    fc1 weight, pre-transposed (y = x @ W.T + b)
    b1_ref : (1, H)       fc1 bias
    w2_ref : (H, D_out)   fc2 weight, pre-transposed
    b2_ref : (1, D_out)   fc2 bias
    o_ref  : (TM, D_out)  output rows for this tile
    """
    x = x_ref[...]

    # fc1: full-width MXU matmul with f32 accumulation, bias added once.
    h = jnp.dot(x, w1_ref[...], preferred_element_type=jnp.float32) + b1_ref[...]

    # Exact GELU (PyTorch nn.GELU default): 0.5 * x * (1 + erf(x / sqrt(2))).
    g = 0.5 * h * (1.0 + jax.lax.erf(h * (1.0 / math.sqrt(2.0))))

    # fc2: full-width MXU matmul into a lane-dense output block.
    out = jnp.dot(g.astype(w2_ref.dtype), w2_ref[...],
                  preferred_element_type=jnp.float32) + b2_ref[...]

    o_ref[...] = out.astype(o_ref.dtype)


def _round_up(x, n):
    return ((x + n - 1) // n) * n


def _choose_tile_m(m):
    # Biggest tile that keeps per-step overhead amortized, while keeping at
    # least 2 grid steps for modest M (megacore sharding on v7x).
    if m >= 2048:
        return 512
    if m >= 512:
        return 256
    if m >= 128:
        return 128
    return max(_round_up(m, 8), 8)


def mlp_pallas(x, w1, b1, w2, b2, *, tile_m=None):
    """x: (..., D_in).  Weights use PyTorch nn.Linear conventions:
    w1: (H, D_in), b1: (H,), w2: (D_out, H), b2: (D_out,)."""
    orig_shape = x.shape
    d_in = orig_shape[-1]
    h_dim = w1.shape[0]
    d_out = w2.shape[0]

    # Fold batch/tokens into the matmul M dimension.
    x2 = x.reshape(-1, d_in)
    m = x2.shape[0]

    if tile_m is None:
        tile_m = _choose_tile_m(m)
    tile_m = min(tile_m, _round_up(m, 8))

    m_pad = _round_up(m, tile_m)
    if m_pad != m:
        x2 = jnp.pad(x2, ((0, m_pad - m), (0, 0)))

    # Pre-transpose weights so the kernel computes y = x @ W_t + b.
    w1_t = jnp.transpose(w1)            # (D_in, H)
    w2_t = jnp.transpose(w2)            # (H, D_out)
    b1_2 = b1.reshape(1, h_dim)
    b2_2 = b2.reshape(1, d_out)

    itemsize = jnp.dtype(x.dtype).itemsize
    cost = pl.CostEstimate(
        flops=2 * m_pad * d_in * h_dim + 2 * m_pad * h_dim * d_out,
        transcendentals=m_pad * h_dim,
        bytes_accessed=itemsize * (m_pad * d_in + d_in * h_dim + h_dim
                                   + h_dim * d_out + d_out + m_pad * d_out),
    )

    out = pl.pallas_call(
        _mlp_kernel,
        out_shape=jax.ShapeDtypeStruct((m_pad, d_out), x.dtype),
        grid_spec=pltpu.PrefetchScalarGridSpec(
            num_scalar_prefetch=0,
            grid=(m_pad // tile_m,),
            in_specs=[
                pl.BlockSpec((tile_m, d_in), lambda i: (i, 0)),
                pl.BlockSpec((d_in, h_dim), lambda i: (0, 0)),
                pl.BlockSpec((1, h_dim), lambda i: (0, 0)),
                pl.BlockSpec((h_dim, d_out), lambda i: (0, 0)),
                pl.BlockSpec((1, d_out), lambda i: (0, 0)),
            ],
            out_specs=pl.BlockSpec((tile_m, d_out), lambda i: (i, 0)),
        ),
        compiler_params=pltpu.CompilerParams(
            dimension_semantics=("parallel",)),
        cost_estimate=cost,
    )(x2, w1_t, b1_2, w2_t, b2_2)

    if m_pad != m:
        out = out[:m]
    return out.reshape(*orig_shape[:-1], d_out)


def mlp_ref(x, w1, b1, w2, b2):
    """Pure-JAX reference mirroring the PyTorch forward exactly (p=0 dropout)."""
    h = x @ w1.T + b1
    g = jax.nn.gelu(h, approximate=False)   # exact (erf) GELU, PyTorch default
    return g @ w2.T + b2


if __name__ == "__main__":
    # Small shapes consistent with the module (ViT-style token MLP):
    # x: (batch, tokens, in_features); hidden = 2x in_features.
    B, N = 2, 128
    in_features, hidden_features, out_features = 128, 256, 128

    key = jax.random.PRNGKey(0)
    kx, kw1, kb1, kw2, kb2 = jax.random.split(key, 5)

    x = jax.random.normal(kx, (B, N, in_features), dtype=jnp.float32)
    w1 = jax.random.normal(kw1, (hidden_features, in_features),
                           dtype=jnp.float32) * (1.0 / math.sqrt(in_features))
    b1 = jax.random.normal(kb1, (hidden_features,), dtype=jnp.float32) * 0.02
    w2 = jax.random.normal(kw2, (out_features, hidden_features),
                           dtype=jnp.float32) * (1.0 / math.sqrt(hidden_features))
    b2 = jax.random.normal(kb2, (out_features,), dtype=jnp.float32) * 0.02

    out = mlp_pallas(x, w1, b1, w2, b2)
    out = jax.block_until_ready(out)

    ref = mlp_ref(x, w1, b1, w2, b2)
    assert out.shape == (B, N, out_features)
    assert jnp.allclose(out, ref, atol=1e-4, rtol=1e-4), "mismatch vs reference"

    print("KERNEL_OK")
</pallas_src>

<mosaic_0001>
module attributes {stable_mosaic.version = 11 : i64} {
  func.func @_mlp_kernel(%arg0: i32, %arg1: memref<128x128xf32, #tpu.memory_space<vmem>>, %arg2: memref<128x256xf32, #tpu.memory_space<vmem>>, %arg3: memref<1x256xf32, #tpu.memory_space<vmem>>, %arg4: memref<256x128xf32, #tpu.memory_space<vmem>>, %arg5: memref<1x128xf32, #tpu.memory_space<vmem>>, %arg6: memref<128x128xf32, #tpu.memory_space<vmem>>) attributes {dimension_semantics = [#tpu.dimension_semantics<parallel>], iteration_bounds = array<i64: 2>, scalar_prefetch = 0 : i64, scratch_operands = 0 : i64, tpu.core_type = #tpu.core_type<tc>, window_params = [{transform_indices = @transform_0, window_bounds = array<i64: 128, 128>}, {pipeline_mode = #tpu.pipeline_mode<synchronous>, transform_indices = @transform_1, window_bounds = array<i64: 128, 256>}, {pipeline_mode = #tpu.pipeline_mode<synchronous>, transform_indices = @transform_2, window_bounds = array<i64: 1, 256>}, {pipeline_mode = #tpu.pipeline_mode<synchronous>, transform_indices = @transform_3, window_bounds = array<i64: 256, 128>}, {pipeline_mode = #tpu.pipeline_mode<synchronous>, transform_indices = @transform_4, window_bounds = array<i64: 1, 128>}, {transform_indices = @transform_5, window_bounds = array<i64: 128, 128>}]} {
    %c0 = arith.constant 0 : index
    %c0_0 = arith.constant 0 : index
    %0 = vector.load %arg1[%c0, %c0_0] : memref<128x128xf32, #tpu.memory_space<vmem>>, vector<128x128xf32>
    %c0_1 = arith.constant 0 : index
    %c0_2 = arith.constant 0 : index
    %1 = vector.load %arg2[%c0_1, %c0_2] : memref<128x256xf32, #tpu.memory_space<vmem>>, vector<128x256xf32>
    %cst = arith.constant dense<0.000000e+00> : vector<128x256xf32>
    %2 = tpu.matmul %0, %1, %cst {dimension_numbers = #tpu.dot_dimension_numbers<[1], [0], [0], [1], [0, 0, 1, 1], [], []>} : vector<128x128xf32>, vector<128x256xf32>, vector<128x256xf32> -> vector<128x256xf32>
    %c0_3 = arith.constant 0 : index
    %c0_4 = arith.constant 0 : index
    %3 = vector.load %arg3[%c0_3, %c0_4] : memref<1x256xf32, #tpu.memory_space<vmem>>, vector<1x256xf32>
    %4 = vector.broadcast %3 : vector<1x256xf32> to vector<128x256xf32>
    %5 = arith.addf %2, %4 : vector<128x256xf32>
    %cst_5 = arith.constant 5.000000e-01 : f32
    %6 = vector.broadcast %cst_5 : f32 to vector<128x256xf32>
    %7 = arith.mulf %6, %5 : vector<128x256xf32>
    %cst_6 = arith.constant 0.707106769 : f32
    %8 = vector.broadcast %cst_6 : f32 to vector<128x256xf32>
    %9 = arith.mulf %5, %8 : vector<128x256xf32>
    %10 = math.erf %9 : vector<128x256xf32>
    %cst_7 = arith.constant 1.000000e+00 : f32
    %11 = vector.broadcast %cst_7 : f32 to vector<128x256xf32>
    %12 = arith.addf %11, %10 : vector<128x256xf32>
    %13 = arith.mulf %7, %12 : vector<128x256xf32>
    %c0_8 = arith.constant 0 : index
    %c0_9 = arith.constant 0 : index
    %14 = vector.load %arg4[%c0_8, %c0_9] : memref<256x128xf32, #tpu.memory_space<vmem>>, vector<256x128xf32>
    %cst_10 = arith.constant dense<0.000000e+00> : vector<128x128xf32>
    %15 = tpu.matmul %13, %14, %cst_10 {dimension_numbers = #tpu.dot_dimension_numbers<[1], [0], [0], [1], [0, 0, 1, 1], [], []>} : vector<128x256xf32>, vector<256x128xf32>, vector<128x128xf32> -> vector<128x128xf32>
    %c0_11 = arith.constant 0 : index
    %c0_12 = arith.constant 0 : index
    %16 = vector.load %arg5[%c0_11, %c0_12] : memref<1x128xf32, #tpu.memory_space<vmem>>, vector<1x128xf32>
    %17 = vector.broadcast %16 : vector<1x128xf32> to vector<128x128xf32>
    %18 = arith.addf %15, %17 : vector<128x128xf32>
    %c0_13 = arith.constant 0 : index
    %c0_14 = arith.constant 0 : index
    %19 = vector.load %arg6[%c0_13, %c0_14] : memref<128x128xf32, #tpu.memory_space<vmem>>, vector<128x128xf32>
    tpu.vector_store %arg6[%c0_13, %c0_14], %18 {strides = array<i32>} : memref<128x128xf32, #tpu.memory_space<vmem>>, vector<128x128xf32>,
    return
  }
  func.func @transform_0(%arg0: i32) -> (i32, i32) {
    %c0_i32 = arith.constant 0 : i32
    %c0_i32_0 = arith.constant 0 : i32
    return %arg0, %c0_i32 : i32, i32
  }
  func.func @transform_1(%arg0: i32) -> (i32, i32) {
    %c0_i32 = arith.constant 0 : i32
    %c0_i32_0 = arith.constant 0 : i32
    %c0_i32_1 = arith.constant 0 : i32
    return %c0_i32, %c0_i32_0 : i32, i32
  }
  func.func @transform_2(%arg0: i32) -> (i32, i32) {
    %c0_i32 = arith.constant 0 : i32
    %c0_i32_0 = arith.constant 0 : i32
    %c0_i32_1 = arith.constant 0 : i32
    return %c0_i32, %c0_i32_0 : i32, i32
  }
  func.func @transform_3(%arg0: i32) -> (i32, i32) {
    %c0_i32 = arith.constant 0 : i32
    %c0_i32_0 = arith.constant 0 : i32
    %c0_i32_1 = arith.constant 0 : i32
    return %c0_i32, %c0_i32_0 : i32, i32
  }
  func.func @transform_4(%arg0: i32) -> (i32, i32) {
    %c0_i32 = arith.constant 0 : i32
    %c0_i32_0 = arith.constant 0 : i32
    %c0_i32_1 = arith.constant 0 : i32
    return %c0_i32, %c0_i32_0 : i32, i32
  }
  func.func @transform_5(%arg0: i32) -> (i32, i32) {
    %c0_i32 = arith.constant 0 : i32
    %c0_i32_0 = arith.constant 0 : i32
    return %arg0, %c0_i32 : i32, i32
  }
}

</mosaic_0001>

<bundles_post_ra>
// kernel: tpu_custom_call.1
= control target key start
LH: loop header
LB: loop body
LE: loop exit
PB: predicated region body
PF: predicated region fallthrough
CT: control target
= control target key end

     0   :  { %10 = vsyncpa [#allocation3], 0  ;;  %s1900_s0 = inlined_call_operand.hbm [shape: f32[256,128], index: 0, kind: input, shape index: {}]   ;;  %s1901_s1 = inlined_call_operand.hbm [shape: f32[128,256], index: 1, kind: input, shape index: {}]   ;;  %s1902_s2 = inlined_call_operand.vmem [shape: f32[1,256], index: 2, kind: input, shape index: {}]   ;;  %s1903_s3 = inlined_call_operand.hbm [shape: f32[256,128], index: 3, kind: input, shape index: {}]   ;;  %s1904_s4 = inlined_call_operand.vmem [shape: f32[1,128], index: 4, kind: input, shape index: {}]   ;;  %s1905_s5 = inlined_call_operand.hbm [shape: f32[256,128], index: 5, kind: output, shape index: {}]  }
   0x1   :  { %12 = vsyncpa [#allocation3 + $0x1], 0 }
   0x2   :  { %13 = vsyncpa [#allocation6], 0 }
   0x3   :  { %14 = vsyncpa [#allocation4], 0 }
   0x4   :  { %16 = vsyncpa [#allocation4 + $0x1], 0  ;;  %s1463_s18 = smov 0   ;;  %s1465_s19 = smov 0  }
   0x5   :  { %s1467_s20 = smov 0   ;;  %s1469_s21 = smov 0  }
   0x6 LB: > { %s1484_s22 = sadd.s32 4294967295, %s1420_s21   ;;  %s961_s23 = sadd.s32 4294967294, %s1420_s21   ;;  %s1420_s21 = sphi %s1469_s21, %s1925_s21   ;;  %s1416_s20 = sphi %s1467_s20, %s1924_s20   ;;  %s1412_s19 = sphi %s1465_s19, %s1923_s19   ;;  %s1408_s18 = sphi %s1463_s18, %s1922_s18  }
   0x7   : > { %p42_p0 = scmp.ne.s32.totalorder %s1412_s19, %s1408_s18  ;;  %p1906_p1 = scmp.eq.s32.totalorder %s1484_s22, 0 }
   0x8   : > { %p156_p3 = scmp.eq.s32.totalorder %s961_s23, 1  ;;  %p962_p5 = scmp.ge.s32.totalorder %s1420_s21, 1 }
   0x9   : > { %p1493_p4 = por %p1906_p1, %p42_p0  ;;  %p163_p7 = scmp.lt.s32.totalorder %s1420_s21, 3 }
   0xa   : > { %p1498_p6 = por %p156_p3, %p42_p0  ;;  %s1422_s27 = smov [#allocation5]  }
   0xb   : > { %s1909_s24 = scalar_select %p1493_p4, 1, 0 }
   0xc   : > { %s1910_s25 = scalar_select %p1498_p6, 1, 0 }
   0xd   : > { %p1503_p8 = pnand %p962_p5, %p163_p7  ;;  %s175_s28 = sshll.u32 %s1422_s27, 4  ;;  %s1507_s28 = int_to_ptr.vmem [resolvable:$true] %s175_s28 }
   0xe   : > { %s1423_s30 = smov [#allocation7]   ;;  %s1264_s9 = scalar_lea.hbm %s1901_s1, 4096 }
   0xf   : > { %p1138_p9 = pneg %p1503_p8  ;;  %s191_s6 = sshll.u32 %s1423_s30, 4  ;;  %s1518_s6 = int_to_ptr.vmem [resolvable:$true] %s191_s6 }
  0x10   : > { %p1265_p12 = scmp.ne.s32.totalorder %s1901_s1, %s1264_s9  ;;  %p1271_p5 = scmp.lt.u32.totalorder %s1264_s9, %s1901_s1 }
  0x11   : > { %p1514_p11 = pnand %p1138_p9, %p1906_p1 }
  0x13   : > { %p1266_p13 = pneg %p1514_p11 }
  0x15   : > { %p1267_p0 = pnand %p1266_p13, %p1265_p12 }
  0x17   : > { %p1268_p3 = pneg %p1267_p0 }
  0x19   : > { %p1273_p7 = pnand %p1271_p5, %p1268_p3 }
  0x1b   : > { %1276 = shalt.err (!%p1273_p7)
}
  0x1c   : > { %s1277_s14 = scalar_lea.vmem %s1507_s28, 4096  ;;  %p1285_p2 = scmp.lt.s32.totalorder %s1507_s28, %s1507_s28 }
  0x1d   : > { %p1278_p9 = scmp.ne.s32.totalorder %s1507_s28, %s1277_s14  ;;  %p1286_p12 = scmp.lt.s32.totalorder %s1277_s14, %s1277_s14 }
  0x1f   : > { %p1280_p10 = pnand %p1278_p9, %p1266_p13  ;;  %p1287_p0 = por %p1286_p12, %p1285_p2 }
  0x21   : > { %p1281_p1 = pneg %p1280_p10 }
  0x23   : > { %p1288_p6 = pnand %p1287_p0, %p1281_p1 }
  0x25   : > { %1291 = shalt.err (!%p1288_p6)
}
  0x26   : > { %s1424_s15 = smov 256   ;;  %s1425_s16 = smov 16  }
  0x27   : > { %1141 = dma.hbm_to_vmem [thread:$0]  (!%p1514_p11), %s1901_s1, 4096, %s1507_s28, [#allocation6], %s1424_s15, %s1424_s15, %s1425_s16  }
  0x28   : > { %s1292_s7 = scalar_lea.hbm %s1903_s3, 4096 }
  0x29   : > { %p1293_p2 = scmp.ne.s32.totalorder %s1903_s3, %s1292_s7  ;;  %p1299_p10 = scmp.lt.u32.totalorder %s1292_s7, %s1903_s3 }
  0x2b   : > { %p1295_p1 = pnand %p1293_p2, %p1266_p13 }
  0x2d   : > { %p1296_p6 = pneg %p1295_p1 }
  0x2f   : > { %p1301_p3 = pnand %p1299_p10, %p1296_p6 }
  0x31   : > { %1304 = shalt.err (!%p1301_p3)
}
  0x32   : > { %s1305_s28 = scalar_lea.vmem %s1518_s6, 4096  ;;  %p1313_p12 = scmp.lt.s32.totalorder %s1518_s6, %s1518_s6 }
  0x33   : > { %p1306_p5 = scmp.ne.s32.totalorder %s1518_s6, %s1305_s28  ;;  %p1314_p0 = scmp.lt.s32.totalorder %s1305_s28, %s1305_s28 }
  0x35   : > { %p1308_p7 = pnand %p1306_p5, %p1266_p13  ;;  %p1315_p2 = por %p1314_p0, %p1313_p12 }
  0x37   : > { %p1309_p9 = pneg %p1308_p7 }
  0x39   : > { %p1316_p1 = pnand %p1315_p2, %p1309_p9 }
  0x3b   : > { %1319 = shalt.err (!%p1316_p1)
}
  0x3c   : > { %s1426_s12 = smov 128   ;;  %s1427_s13 = smov 8  }
  0x3d   : > { %1144 = dma.hbm_to_vmem [thread:$0]  (!%p1514_p11), %s1903_s3, 4096, %s1518_s6, [#allocation6], %s1426_s12, %s1426_s12, %s1427_s13  }
  0x3e   : > { %s1576_s16 = sadd.s32 1, %s1420_s21   ;;  %s29_s23 = sadd.s32 1, %s1416_s20 }
  0x3f   : > { %s26_s17 = ssub.s32 %s1420_s21, %s1576_s16  ;;  %p36_p6 = scmp.ne.s32.totalorder %s1416_s20, %s1412_s19 }
  0x40   : > { %p27_p13 = scmp.eq.s32.totalorder %s26_s17, 0  ;;  %p37_p10 = scmp.eq.s32.totalorder %s1420_s21, 0 }
  0x41   : > { %p1913_p5 = scmp.eq.s32.totalorder %s1484_s22, 1  ;;  %p1155_p9 = scmp.lt.s32.totalorder %s1420_s21, 2 }
  0x42   : > { %s1585_s27 = scalar_select %p27_p13, %s1416_s20, %s29_s23  }
  0x43   : > { %p38_p3 = por %p37_p10, %p36_p6  ;;  %p1589_p7 = por %p1913_p5, %p36_p6 }
  0x44   : > { %s208_s30 = sand.u32 1, %s1416_s20   ;;  %s980_s6 = sshll.u32 %s1420_s21, 11 }
  0x45   : > { %s1914_s29 = scalar_select %p1589_p7, 1, 0 }
  0x46   : > { %s966_s7 = sshll.u32 %s208_s30, 7  ;;  %s1599_s10 = scalar_lea.hbm %s1900_s0, %s980_s6 }
  0x47   : > { %s212_s11 = scalar_lea.vmem [#allocation2], %s966_s7  ;;  %p1603_p11 = pnand %p1155_p9, %p38_p3 }
  0x48   : > { %s219_s28 = sshll.u32 %s212_s11, 4  ;;  %s1607_s15 = scalar_lea.sflag [#allocation3], %s208_s30  ;;  %s1601_s28 = int_to_ptr.vmem [resolvable:$true] %s219_s28 }
  0x49   : > { %s1320_s17 = scalar_lea.hbm %s1599_s10, 2048  ;;  %p1322_p0 = pneg %p1603_p11 }
  0x4a   : > { %p1321_p12 = scmp.ne.s32.totalorder %s1599_s10, %s1320_s17  ;;  %s1325_s6 = scalar_lea.hbm %s1900_s0, 4096 }
  0x4b   : > { %p1326_p13 = scmp.lt.u32.totalorder %s1599_s10, %s1900_s0  ;;  %p1327_p6 = scmp.lt.u32.totalorder %s1325_s6, %s1320_s17 }
  0x4c   : > { %p1323_p2 = pnand %p1322_p0, %p1321_p12  ;;  %p1329_p3 = scmp.lt.u32.totalorder %s1320_s17, %s1599_s10 }
  0x4d   : > { %p1328_p10 = por %p1327_p6, %p1326_p13 }
  0x4e   : > { %p1324_p1 = pneg %p1323_p2 }
  0x4f   : > { %p1330_p5 = por %p1329_p3, %p1328_p10 }
  0x51   : > { %p1331_p9 = pnand %p1330_p5, %p1324_p1 }
  0x53   : > { %1334 = shalt.err (!%p1331_p9)
}
  0x54   : > { %s1335_s30 = scalar_lea.vmem %s1601_s28, 2048  ;;  %s1428_s11 = smov [#allocation2]  }
  0x55   : > { %p1336_p12 = scmp.ne.s32.totalorder %s1601_s28, %s1335_s30  ;;  %s1340_s23 = sshll.u32 %s1428_s11, 4  ;;  %s1341_s23 = int_to_ptr.vmem [resolvable:$false] %s1340_s23 }
  0x56   : > { %s1342_s7 = scalar_lea.vmem %s1341_s23, 4096  ;;  %p1343_p4 = scmp.lt.s32.totalorder %s1601_s28, %s1341_s23 }
  0x57   : > { %p1338_p2 = pnand %p1336_p12, %p1322_p0  ;;  %p1344_p13 = scmp.lt.s32.totalorder %s1342_s7, %s1335_s30 }
  0x59   : > { %p1339_p7 = pneg %p1338_p2  ;;  %p1345_p6 = por %p1344_p13, %p1343_p4 }
  0x5b   : > { %p1346_p10 = pnand %p1345_p6, %p1339_p7 }
  0x5d   : > { %1349 = shalt.err (!%p1346_p10)
}
  0x5e   : > { %1148 = dma.hbm_to_vmem [thread:$0]  (!%p1603_p11), %s1599_s10, 2048, %s1601_s28, %s1607_s15, %s1426_s12, %s1426_s12, %s1427_s13  }
  0x5f   : > { %231 = sbr.rel (%p1503_p8) target bundleno = 666 (0x29a), region = 40  ;;  %s1641_s17 = sand.u32 (!%p1503_p8), 1, %s1412_s19  }
  0x60   : > { %s970_s6 = sshll.u32 (!%p1503_p8), %s1641_s17, 7  ;;  %s234_s8 = scalar_lea.sflag (!%p1503_p8), [#allocation3], %s1641_s17 }
  0x61   : > { %s1647_s14 = scalar_lea.vmem (!%p1503_p8), [#allocation2], %s970_s6  ;;  %p1916_p4 = scmp.ne.s32.totalorder (!%p1503_p8), %s1909_s24, 0 }
  0x66   : > { %1395 = dma.done.wait (%p1916_p4), %s234_s8, 2048  }
  0x67   : > { %1397 = vsyncadd (%p1916_p4), %s234_s8, 4294965248  ;;  %p1917_p7 = scmp.eq.s32.totalorder %s1484_s22, 0 }
  0x69   : > { %1399 = dma.done.wait (%p1917_p7), [#allocation6], 8192   ;;  %p1918_p8 = pmov %p1917_p7 }
  0x6a   : > { %v1429_v0 = vmov 0.0   ;;  %v291_v1 = vld [vmem:[#allocation5 + $0x8] sm:$0xff]  ;;  %v293_v2 = vld [vmem:[#allocation5 + $0x18] sm:$0xff]  ;;  %v290_v3 = vld [vmem:[#allocation5] sm:$0xff]  ;;  %s1816_s10 = scalar_lea.vmem [#allocation8], %s970_s6  ;;  %s981_s28 = sshll.u32 %s1484_s22, 11 }
  0x6b   : > { %1401 = vsyncadd (%p1918_p8), [#allocation6], 4294959104  ;;  %398 = vmatprep.mubr.f32.mxu0 %v1429_v0  ;;  %v1062_v4 = vpack.c.bf16 %v293_v2, %v291_v1  ;;  %v292_v5 = vld [vmem:[#allocation5 + $0x10] sm:$0xff]  ;;  %v295_v6 = vld [vmem:[#allocation5 + $0x28] sm:$0xff]  ;;  %s869_s15 = sshll.u32 %s1816_s10, 4  ;;  %s1852_s11 = scalar_lea.hbm %s1905_s5, %s981_s28  ;;  %s1854_s15 = int_to_ptr.vmem [resolvable:$true] %s869_s15 }
  0x6c   : > { %v297_v7 = vld [vmem:[#allocation5 + $0x38] sm:$0xff]  ;;  %v1064_v8 = vpack.c.bf16 %v292_v5, %v290_v3  ;;  %v294_v10 = vld [vmem:[#allocation5 + $0x20] sm:$0xff]  ;;  %v296_v11 = vld [vmem:[#allocation5 + $0x30] sm:$0xff]  ;;  %s856_s23 = scalar_lea.sflag [#allocation4], %s1641_s17  ;;  %s1350_s7 = scalar_lea.vmem %s1854_s15, 2048 }
  0x6d   : > { %v1066_v9 = vpack.c.bf16 %v297_v7, %v295_v6  ;;  %v299_v12 = vld [vmem:[#allocation5 + $0x48] sm:$0xff]  ;;  %1063 = vmatprep.subr.bf16.mxu0 %v1062_v4  ;;  %v301_v13 = vld [vmem:[#allocation5 + $0x58] sm:$0xff]  ;;  %v1068_v14 = vpack.c.bf16 %v296_v11, %v294_v10  ;;  %v298_v16 = vld [vmem:[#allocation5 + $0x40] sm:$0xff]  ;;  %p1351_p11 = scmp.ne.s32.totalorder %s1854_s15, %s1350_s7  ;;  %p1919_p0 = scmp.ne.s32.totalorder %s1914_s29, 0 }
  0x6e   : > { %1065 = vmatpush1.bf16.msra.mxu0 %v1064_v8  ;;  %v1070_v15 = vpack.c.bf16 %v301_v13, %v299_v12  ;;  %v300_v17 = vld [vmem:[#allocation5 + $0x50] sm:$0xff]  ;;  %v303_v18 = vld [vmem:[#allocation5 + $0x68] sm:$0xff]  ;;  %v305_v19 = vld [vmem:[#allocation5 + $0x78] sm:$0xff]  ;;  %s1430_s22 = smov [#allocation8]  }
  0x6f   : > { %1067 = vmatprep.subr.bf16.mxu0 %v1066_v9  ;;  %v1072_v20 = vpack.c.bf16 %v300_v17, %v298_v16  ;;  %v1074_v21 = vpack.c.bf16 %v305_v19, %v303_v18  ;;  %v302_v22 = vld [vmem:[#allocation5 + $0x60] sm:$0xff]  ;;  %v304_v23 = vld [vmem:[#allocation5 + $0x70] sm:$0xff]  ;;  %v307_v24 = vld [vmem:[#allocation5 + $0x88] sm:$0xff]  ;;  %p1352_p1 = pnand %p1351_p11, %p1919_p0  ;;  %s1354_s6 = sshll.u32 %s1430_s22, 4  ;;  %s1355_s6 = int_to_ptr.vmem [resolvable:$false] %s1354_s6 }
  0x70   : > { %v309_v25 = vld [vmem:[#allocation5 + $0x98] sm:$0xff]  ;;  %v1076_v26 = vpack.c.bf16 %v304_v23, %v302_v22  ;;  %v306_v28 = vld [vmem:[#allocation5 + $0x80] sm:$0xff]  ;;  %v308_v29 = vld [vmem:[#allocation5 + $0x90] sm:$0xff]  ;;  %s1356_s8 = scalar_lea.vmem %s1355_s6, 4096  ;;  %p1357_p5 = scmp.lt.s32.totalorder %s1854_s15, %s1355_s6 }
  0x71   : > { %v1078_v27 = vpack.c.bf16 %v309_v25, %v307_v24  ;;  %v311_v30 = vld [vmem:[#allocation5 + $0xa8] sm:$0xff]  ;;  %v313_v31 = vld [vmem:[#allocation5 + $0xb8] sm:$0xff]  ;;  %v310_v32 = vld [vmem:[#allocation5 + $0xa0] sm:$0xff]  ;;  %v1080_v34 = vpack.c.bf16 %v308_v29, %v306_v28  ;;  %p1353_p3 = pneg %p1352_p1  ;;  %p1358_p9 = scmp.lt.s32.totalorder %s1356_s8, %s1350_s7 }
  0x72   : > { %1069 = vmatpush1.bf16.msra.mxu0 %v1068_v14  ;;  %v312_v33 = vld [vmem:[#allocation5 + $0xb0] sm:$0xff]  ;;  %v315_v35 = vld [vmem:[#allocation5 + $0xc8] sm:$0xff]  ;;  %v317_v36 = vld [vmem:[#allocation5 + $0xd8] sm:$0xff]  ;;  %v1082_v40 = vpack.c.bf16 %v313_v31, %v311_v30 }
  0x73   : > { %1071 = vmatprep.subr.bf16.mxu0 %v1070_v15  ;;  %v671_v37 = vld [vmem:[#allocation7 + $0x80] sm:$0xff]  ;;  %v672_v38 = vld [vmem:[#allocation7 + $0x88] sm:$0xff]  ;;  %v673_v43 = vld [vmem:[#allocation7 + $0x90] sm:$0xff]  ;;  %v1084_v51 = vpack.c.bf16 %v312_v33, %v310_v32  ;;  %v1086_v54 = vpack.c.bf16 %v317_v36, %v315_v35  ;;  %p1359_p12 = por %p1358_p9, %p1357_p5 }
  0x74   : > { %v655_v39 = vld [vmem:[#allocation7] sm:$0xff]  ;;  %v1094_v41 = vpack.c.bf16 %v672_v38, %v671_v37  ;;  %v656_v42 = vld [vmem:[#allocation7 + $0x8] sm:$0xff]  ;;  %v674_v44 = vld [vmem:[#allocation7 + $0x98] sm:$0xff] }
  0x75   : > { %v1096_v45 = vpack.c.bf16 %v656_v42, %v655_v39  ;;  %v1098_v46 = vpack.c.bf16 %v674_v44, %v673_v43  ;;  %v657_v47 = vld [vmem:[#allocation7 + $0x10] sm:$0xff]  ;;  %v658_v48 = vld [vmem:[#allocation7 + $0x18] sm:$0xff]  ;;  %v675_v49 = vld [vmem:[#allocation7 + $0xa0] sm:$0xff]  ;;  %p1360_p2 = pnand %p1359_p12, %p1353_p3 }
  0x76   : > { %1073 = vmatpush1.bf16.msra.mxu0 %v1072_v20  ;;  %1095 = vmatprep.subr.bf16.mxu1 %v1094_v41  ;;  %v676_v50 = vld [vmem:[#allocation7 + $0xa8] sm:$0xff]  ;;  %v314_v52 = vld [vmem:[#allocation5 + $0xc0] sm:$0xff]  ;;  %v1100_v53 = vpack.c.bf16 %v658_v48, %v657_v47  ;;  %v316_v55 = vld [vmem:[#allocation5 + $0xd0] sm:$0xff] }
  0x77   : > { %1075 = vmatprep.subr.bf16.mxu0 %v1074_v21  ;;  %1097 = vmatpush3.bf16.msra.mxu1 %v1096_v45  ;;  %v1102_v56 = vpack.c.bf16 %v676_v50, %v675_v49  ;;  %v659_v57 = vld [vmem:[#allocation7 + $0x20] sm:$0xff]  ;;  %v660_v58 = vld [vmem:[#allocation7 + $0x28] sm:$0xff]  ;;  %v321_v60 = vld [vmem:[#allocation5 + $0xf8] sm:$0xff]  ;;  %v1088_v61 = vpack.c.bf16 %v316_v55, %v314_v52  ;;  %v324_v49 = vlaneseq }
  0x78   : > { %1099 = vmatprep.subr.bf16.mxu1 %v1098_v46  ;;  %v319_v59 = vld [vmem:[#allocation5 + $0xe8] sm:$0xff]  ;;  %v1104_v62 = vpack.c.bf16 %v660_v58, %v659_v57  ;;  %v318_v1 = vld [vmem:[#allocation5 + $0xe0] sm:$0xff]  ;;  %v320_v2 = vld [vmem:[#allocation5 + $0xf0] sm:$0xff] }
  0x79   : > { %v1090_v63 = vpack.c.bf16 %v321_v60, %v319_v59  ;;  %v1092_v3 = vpack.c.bf16 %v320_v2, %v318_v1  ;;  %v274_v4 = vld [vmem:[%s1647_s14] sm:$0xff]  ;;  %v275_v5 = vld [vmem:[%s1647_s14 + $0x8] sm:$0xff]  ;;  %v276_v6 = vld [vmem:[%s1647_s14 + $0x10] sm:$0xff]  ;;  %v325_v50 = vshrl.u32 %v324_v49, 7 }
  0x7a   : > { %1077 = vmatpush1.bf16.msra.mxu0 %v1076_v26  ;;  %v277_v7 = vld [vmem:[%s1647_s14 + $0x18] sm:$0xff]  ;;  %v278_v8 = vld [vmem:[%s1647_s14 + $0x20] sm:$0xff]  ;;  %v279_v9 = vld [vmem:[%s1647_s14 + $0x28] sm:$0xff] }
  0x7b   : > { %1079 = vmatprep.subr.bf16.mxu0 %v1078_v27  ;;  %1101 = vmatpush3.bf16.msra.mxu1 %v1100_v53  ;;  %v280_v10 = vld [vmem:[%s1647_s14 + $0x30] sm:$0xff]  ;;  %v281_v11 = vld [vmem:[%s1647_s14 + $0x38] sm:$0xff]  ;;  %v282_v12 = vld [vmem:[%s1647_s14 + $0x40] sm:$0xff]  ;;  %v330_v53 = vsub.s32 1, %v325_v50 }
  0x7c   : > { %1103 = vmatprep.subr.bf16.mxu1 %v1102_v56  ;;  %v283_v13 = vld [vmem:[%s1647_s14 + $0x48] sm:$0xff]  ;;  %v284_v14 = vld [vmem:[%s1647_s14 + $0x50] sm:$0xff]  ;;  %v285_v15 = vld [vmem:[%s1647_s14 + $0x58] sm:$0xff] }
  0x7d   : > { %v286_v16 = vld [vmem:[%s1647_s14 + $0x60] sm:$0xff]  ;;  %v287_v17 = vld [vmem:[%s1647_s14 + $0x68] sm:$0xff]  ;;  %v288_v18 = vld [vmem:[%s1647_s14 + $0x70] sm:$0xff] }
  0x7e   : > { %1081 = vmatpush1.bf16.msra.mxu0 %v1080_v34  ;;  %v289_v19 = vld [vmem:[%s1647_s14 + $0x78] sm:$0xff]  ;;  %v677_v20 = vld [vmem:[#allocation7 + $0xb0] sm:$0xff]  ;;  %v679_v26 = vld [vmem:[#allocation7 + $0xc0] sm:$0xff] }
  0x7f   : > { %1083 = vmatprep.subr.bf16.mxu0 %v1082_v40  ;;  %1105 = vmatpush3.bf16.msra.mxu1 %v1104_v62  ;;  %v678_v21 = vld [vmem:[#allocation7 + $0xb8] sm:$0xff]  ;;  %v661_v23 = vld [vmem:[#allocation7 + $0x30] sm:$0xff]  ;;  %v680_v27 = vld [vmem:[#allocation7 + $0xc8] sm:$0xff] }
  0x80   : > { %v1106_v22 = vpack.c.bf16 %v678_v21, %v677_v20  ;;  %v662_v24 = vld [vmem:[#allocation7 + $0x38] sm:$0xff]  ;;  %v1110_v28 = vpack.c.bf16 %v680_v27, %v679_v26  ;;  %v663_v29 = vld [vmem:[#allocation7 + $0x40] sm:$0xff]  ;;  %v664_v30 = vld [vmem:[#allocation7 + $0x48] sm:$0xff] }
  0x81   : > { %v1108_v25 = vpack.c.bf16 %v662_v24, %v661_v23  ;;  %v1112_v31 = vpack.c.bf16 %v664_v30, %v663_v29  ;;  %v681_v32 = vld [vmem:[#allocation7 + $0xd0] sm:$0xff]  ;;  %v666_v35 = vld [vmem:[#allocation7 + $0x58] sm:$0xff]  ;;  %v683_v37 = vld [vmem:[#allocation7 + $0xe0] sm:$0xff] }
  0x82   : > { %1085 = vmatpush1.bf16.msra.mxu0 %v1084_v51  ;;  %1107 = vmatprep.subr.bf16.mxu1 %v1106_v22  ;;  %v665_v34 = vld [vmem:[#allocation7 + $0x50] sm:$0xff]  ;;  %v684_v38 = vld [vmem:[#allocation7 + $0xe8] sm:$0xff]  ;;  %v667_v40 = vld [vmem:[#allocation7 + $0x60] sm:$0xff]  ;;  %v326_v51 = vsub.s32 0, %v325_v50 }
  0x83   : > { %1087 = vmatprep.subr.bf16.mxu0 %v1086_v54  ;;  %1109 = vmatpush3.bf16.msra.mxu1 %v1108_v25  ;;  %v1116_v36 = vpack.c.bf16 %v666_v35, %v665_v34  ;;  %v1118_v39 = vpack.c.bf16 %v684_v38, %v683_v37  ;;  %v668_v41 = vld [vmem:[#allocation7 + $0x68] sm:$0xff]  ;;  %v685_v43 = vld [vmem:[#allocation7 + $0xf0] sm:$0xff]  ;;  %v686_v44 = vld [vmem:[#allocation7 + $0xf8] sm:$0xff] }
  0x84   : > { %1111 = vmatprep.subr.bf16.mxu1 %v1110_v28  ;;  %v1120_v42 = vpack.c.bf16 %v668_v41, %v667_v40  ;;  %v1122_v45 = vpack.c.bf16 %v686_v44, %v685_v43  ;;  %v669_v46 = vld [vmem:[#allocation7 + $0x70] sm:$0xff]  ;;  %v670_v47 = vld [vmem:[#allocation7 + $0x78] sm:$0xff]  ;;  %v322_v52 = vld [vmem:[%s1902_s2] sm:$0x3] }
  0x85   : > { %v1124_v48 = vpack.c.bf16 %v670_v47, %v669_v46  ;;  %v1692_v54 = vrot.slane %v322_v52, %v326_v51  ;;  %v1694_v55 = vrot.slane %v322_v52, %v330_v53 }
  0x86   : > { %1089 = vmatpush1.bf16.msra.mxu0 %v1088_v61 }
  0x87   : > { %1091 = vmatprep.subr.bf16.mxu0 %v1090_v63  ;;  %1113 = vmatpush3.bf16.msra.mxu1 %v1112_v31 }
  0x8a   : > { %1093 = vmatpush1.bf16.msra.mxu0 %v1092_v3 }
  0x8d   : > { %399 = vmatmul.mubr.f32.vlgmr.msra.gmra.mrb[0].mxu0 %v274_v4 }
  0x8e   : > { %404 = vmatprep.mubr.f32.mxu0 %v1429_v0 }
  0x91   : > { %405 = vmatmul.mubr.f32.gmra.mrb[2].mxu0 %v275_v5 }
  0x92   : > { %410 = vmatprep.mubr.f32.mxu0 %v1429_v0 }
  0x95   : > { %411 = vmatmul.mubr.f32.gmra.mrb[4].mxu0 %v276_v6 }
  0x96   : > { %416 = vmatprep.mubr.f32.mxu0 %v1429_v0 }
  0x99   : > { %417 = vmatmul.mubr.f32.gmra.mrb[6].mxu0 %v277_v7 }
  0x9a   : > { %422 = vmatprep.mubr.f32.mxu0 %v1429_v0 }
  0x9d   : > { %423 = vmatmul.mubr.f32.gmra.mrb[8].mxu0 %v278_v8 }
  0x9e   : > { %428 = vmatprep.mubr.f32.mxu0 %v1429_v0 }
  0xa1   : > { %429 = vmatmul.mubr.f32.gmra.mrb[10].mxu0 %v279_v9 }
  0xa2   : > { %434 = vmatprep.mubr.f32.mxu0 %v1429_v0 }
  0xa5   : > { %435 = vmatmul.mubr.f32.gmra.mrb[12].mxu0 %v280_v10 }
  0xa6   : > { %440 = vmatprep.mubr.f32.mxu0 %v1429_v0 }
  0xa9   : > { %441 = vmatmul.mubr.f32.gmra.mrb[14].mxu0 %v281_v11 }
  0xaa   : > { %446 = vmatprep.mubr.f32.mxu0 %v1429_v0 }
  0xad   : > { %447 = vmatmul.mubr.f32.gmra.mrb[16].mxu0 %v282_v12 }
  0xae   : > { %452 = vmatprep.mubr.f32.mxu0 %v1429_v0 }
  0xb1   : > { %453 = vmatmul.mubr.f32.gmra.mrb[18].mxu0 %v283_v13 }
  0xb2   : > { %458 = vmatprep.mubr.f32.mxu0 %v1429_v0 }
  0xb5   : > { %459 = vmatmul.mubr.f32.gmra.mrb[20].mxu0 %v284_v14 }
  0xb6   : > { %464 = vmatprep.mubr.f32.mxu0 %v1429_v0 }
  0xb9   : > { %465 = vmatmul.mubr.f32.gmra.mrb[22].mxu0 %v285_v15 }
  0xba   : > { %470 = vmatprep.mubr.f32.mxu0 %v1429_v0 }
  0xbd   : > { %471 = vmatmul.mubr.f32.gmra.mrb[24].mxu0 %v286_v16 }
  0xbe   : > { %476 = vmatprep.mubr.f32.mxu0 %v1429_v0 }
  0xc1   : > { %477 = vmatmul.mubr.f32.gmra.mrb[26].mxu0 %v287_v17 }
  0xc2   : > { %482 = vmatprep.mubr.f32.mxu0 %v1429_v0 }
  0xc5   : > { %483 = vmatmul.mubr.f32.gmra.mrb[28].mxu0 %v288_v18 }
  0xc6   : > { %488 = vmatprep.mubr.f32.mxu0 %v1429_v0  ;;  %v682_v0 = vld [vmem:[#allocation7 + $0xd8] sm:$0xff] }
  0xc7   : > { %v1114_v33 = vpack.c.bf16 %v682_v0, %v681_v32 }
  0xc9   : > { %489 = vmatmul.mubr.f32.gmra.mrb[30].mxu0 %v289_v19  ;;  %1115 = vmatprep.subr.bf16.mxu1 %v1114_v33 }
  0xca   : > { %1117 = vmatpush3.bf16.msra.mxu1 %v1116_v36 }
  0xcb   : > { %1119 = vmatprep.subr.bf16.mxu1 %v1118_v39 }
  0xce   : > { %1121 = vmatpush3.bf16.msra.mxu1 %v1120_v42 }
  0xcf   : > { %1123 = vmatprep.subr.bf16.mxu1 %v1122_v45 }
  0xd2   : > { %1125 = vmatpush3.bf16.msra.mxu1 %v1124_v48 }
 0x160   : > { %v400_v56 = vpop.f32.mrb[0].mxu0 }
 0x161   : > { %v401_v57 = vadd.f32 %v400_v56, %v1692_v54  ;;  %v402_v58 = vpop.f32.mrb[1].mxu0 }
 0x162   : > { %v403_v59 = vadd.f32 %v402_v58, %v1694_v55 }
 0x163   : > { %v527_v60 = vmul.f32 0.70710677, %v401_v57  ;;  %v495_v25 = vmul.f32 0.5, %v401_v57 }
 0x164   : > { %v528_v61 = vmul.f32 0.70710677, %v403_v59  ;;  %v406_v62 = vpop.f32.mrb[2].mxu0  ;;  %v496_v23 = vmul.f32 0.5, %v403_v59 }
 0x165   : > { %1200 = verf.f32 %v527_v60  ;;  %v407_v63 = vadd.f32 %v406_v62, %v1692_v54  ;;  %v408_v1 = vpop.f32.mrb[3].mxu0 }
 0x166   : > { %1202 = verf.f32 %v528_v61  ;;  %v409_v2 = vadd.f32 %v408_v1, %v1694_v55 }
 0x167   : > { %v529_v3 = vmul.f32 0.70710677, %v407_v63  ;;  %v497_v38 = vmul.f32 0.5, %v407_v63 }
 0x168   : > { %v530_v4 = vmul.f32 0.70710677, %v409_v2  ;;  %v412_v5 = vpop.f32.mrb[4].mxu0  ;;  %v498_v34 = vmul.f32 0.5, %v409_v2 }
 0x169   : > { %1204 = verf.f32 %v529_v3  ;;  %v413_v6 = vadd.f32 %v412_v5, %v1692_v54  ;;  %v414_v7 = vpop.f32.mrb[5].mxu0 }
 0x16a   : > { %1206 = verf.f32 %v530_v4  ;;  %v415_v8 = vadd.f32 %v414_v7, %v1694_v55 }
 0x16b   : > { %v531_v9 = vmul.f32 0.70710677, %v413_v6  ;;  %v499_v52 = vmul.f32 0.5, %v413_v6 }
 0x16c   : > { %v532_v10 = vmul.f32 0.70710677, %v415_v8  ;;  %v418_v11 = vpop.f32.mrb[6].mxu0  ;;  %v500_v48 = vmul.f32 0.5, %v415_v8 }
 0x16d   : > { %1208 = verf.f32 %v531_v9  ;;  %v1703_v12 = vadd.f32 %v418_v11, %v1692_v54  ;;  %v420_v13 = vpop.f32.mrb[7].mxu0 }
 0x16e   : > { %1210 = verf.f32 %v532_v10  ;;  %v421_v14 = vadd.f32 %v420_v13, %v1694_v55 }
 0x16f   : > { %v1201_v15 = vpop.eup %1200  ;;  %v533_v16 = vmul.f32 0.70710677, %v1703_v12  ;;  %v501_v5 = vmul.f32 0.5, %v1703_v12 }
 0x170   : > { %v1203_v17 = vpop.eup %1202  ;;  %v591_v18 = vadd.f32 1.0, %v1201_v15  ;;  %v534_v19 = vmul.f32 0.70710677, %v421_v14  ;;  %v424_v20 = vpop.f32.mrb[8].mxu0  ;;  %v502_v1 = vmul.f32 0.5, %v421_v14 }
 0x171   : > { %1212 = verf.f32 %v533_v16  ;;  %v1708_v21 = vadd.f32 %v424_v20, %v1692_v54  ;;  %v426_v22 = vpop.f32.mrb[9].mxu0  ;;  %v592_v24 = vadd.f32 1.0, %v1203_v17 }
 0x172   : > { %1214 = verf.f32 %v534_v19  ;;  %v1711_v26 = vadd.f32 %v426_v22, %v1694_v55  ;;  %v623_v33 = vmul.f32 %v591_v18, %v495_v25 }
 0x173   : > { %v1205_v27 = vpop.eup %1204  ;;  %v535_v28 = vmul.f32 0.70710677, %v1708_v21  ;;  %v624_v29 = vmul.f32 %v592_v24, %v496_v23  ;;  %v503_v19 = vmul.f32 0.5, %v1708_v21 }
 0x174   : > { %v1207_v30 = vpop.eup %1206  ;;  %v593_v31 = vadd.f32 1.0, %v1205_v27  ;;  %v536_v32 = vmul.f32 0.70710677, %v1711_v26  ;;  %v430_v0 = vpop.f32.mrb[10].mxu0  ;;  %v504_v16 = vmul.f32 0.5, %v1711_v26 }
 0x175   : > { %v594_v35 = vadd.f32 1.0, %v1207_v30  ;;  %1216 = verf.f32 %v535_v28  ;;  %v1716_v36 = vadd.f32 %v430_v0, %v1692_v54  ;;  %v432_v37 = vpop.f32.mrb[11].mxu0  ;;  %758 = vmatprep.mubr.f32.mxu1 %v624_v29 }
 0x176   : > { %1218 = verf.f32 %v536_v32  ;;  %v1719_v39 = vadd.f32 %v432_v37, %v1694_v55  ;;  %759 = vmatmul.mubr.f32.vlgmr.msra.gmra.mrb[0].mxu1 %v623_v33  ;;  %v625_v47 = vmul.f32 %v593_v31, %v497_v38 }
 0x177   : > { %v1209_v40 = vpop.eup %1208  ;;  %v537_v41 = vmul.f32 0.70710677, %v1716_v36  ;;  %v626_v42 = vmul.f32 %v594_v35, %v498_v34  ;;  %v505_v0 = vmul.f32 0.5, %v1716_v36 }
 0x178   : > { %v1211_v43 = vpop.eup %1210  ;;  %v595_v44 = vadd.f32 1.0, %v1209_v40  ;;  %v538_v45 = vmul.f32 0.70710677, %v1719_v39  ;;  %v436_v46 = vpop.f32.mrb[12].mxu0  ;;  %v506_v30 = vmul.f32 0.5, %v1719_v39 }
 0x179   : > { %v596_v49 = vadd.f32 1.0, %v1211_v43  ;;  %1220 = verf.f32 %v537_v41  ;;  %v1724_v50 = vadd.f32 %v436_v46, %v1692_v54  ;;  %v438_v51 = vpop.f32.mrb[13].mxu0  ;;  %763 = vmatprep.mubr.f32.mxu1 %v626_v42 }
 0x17a   : > { %1222 = verf.f32 %v538_v45  ;;  %v1727_v53 = vadd.f32 %v438_v51, %v1694_v55  ;;  %764 = vmatmul.mubr.f32.gmra.mrb[2].mxu1 %v625_v47  ;;  %v627_v63 = vmul.f32 %v595_v44, %v499_v52 }
 0x17b   : > { %v1213_v56 = vpop.eup %1212  ;;  %v539_v57 = vmul.f32 0.70710677, %v1724_v50  ;;  %v628_v58 = vmul.f32 %v596_v49, %v500_v48  ;;  %v507_v46 = vmul.f32 0.5, %v1724_v50 }
 0x17c   : > { %v1215_v59 = vpop.eup %1214  ;;  %v597_v60 = vadd.f32 1.0, %v1213_v56  ;;  %v540_v61 = vmul.f32 0.70710677, %v1727_v53  ;;  %v442_v62 = vpop.f32.mrb[14].mxu0  ;;  %v508_v43 = vmul.f32 0.5, %v1727_v53 }
 0x17d   : > { %v598_v2 = vadd.f32 1.0, %v1215_v59  ;;  %1224 = verf.f32 %v539_v57  ;;  %v1732_v3 = vadd.f32 %v442_v62, %v1692_v54  ;;  %v444_v4 = vpop.f32.mrb[15].mxu0  ;;  %768 = vmatprep.mubr.f32.mxu1 %v628_v58 }
 0x17e   : > { %1226 = verf.f32 %v540_v61  ;;  %v1736_v6 = vadd.f32 %v444_v4, %v1694_v55  ;;  %769 = vmatmul.mubr.f32.gmra.mrb[4].mxu1 %v627_v63  ;;  %v629_v15 = vmul.f32 %v597_v60, %v501_v5 }
 0x17f   : > { %v1217_v7 = vpop.eup %1216  ;;  %v541_v8 = vmul.f32 0.70710677, %v1732_v3  ;;  %v630_v9 = vmul.f32 %v598_v2, %v502_v1  ;;  %v509_v62 = vmul.f32 0.5, %v1732_v3 }
 0x180   : > { %v1219_v10 = vpop.eup %1218  ;;  %v599_v11 = vadd.f32 1.0, %v1217_v7  ;;  %v542_v13 = vmul.f32 0.70710677, %v1736_v6  ;;  %v448_v14 = vpop.f32.mrb[16].mxu0  ;;  %v510_v59 = vmul.f32 0.5, %v1736_v6 }
 0x181   : > { %v600_v17 = vadd.f32 1.0, %v1219_v10  ;;  %1228 = verf.f32 %v541_v8  ;;  %v1742_v12 = vadd.f32 %v448_v14, %v1692_v54  ;;  %v450_v18 = vpop.f32.mrb[17].mxu0  ;;  %773 = vmatprep.mubr.f32.mxu1 %v630_v9 }
 0x182   : > { %1230 = verf.f32 %v542_v13  ;;  %v1746_v20 = vadd.f32 %v450_v18, %v1694_v55  ;;  %774 = vmatmul.mubr.f32.gmra.mrb[6].mxu1 %v629_v15  ;;  %v631_v29 = vmul.f32 %v599_v11, %v503_v19 }
 0x183   : > { %v1221_v22 = vpop.eup %1220  ;;  %v543_v23 = vmul.f32 0.70710677, %v1742_v12  ;;  %v632_v24 = vmul.f32 %v600_v17, %v504_v16  ;;  %v511_v14 = vmul.f32 0.5, %v1742_v12 }
 0x184   : > { %v1223_v25 = vpop.eup %1222  ;;  %v601_v26 = vadd.f32 1.0, %v1221_v22  ;;  %v544_v27 = vmul.f32 0.70710677, %v1746_v20  ;;  %v454_v28 = vpop.f32.mrb[18].mxu0  ;;  %v512_v10 = vmul.f32 0.5, %v1746_v20 }
 0x185   : > { %v602_v31 = vadd.f32 1.0, %v1223_v25  ;;  %1232 = verf.f32 %v543_v23  ;;  %v1752_v21 = vadd.f32 %v454_v28, %v1692_v54  ;;  %v456_v32 = vpop.f32.mrb[19].mxu0  ;;  %778 = vmatprep.mubr.f32.mxu1 %v632_v24 }
 0x186   : > { %1234 = verf.f32 %v544_v27  ;;  %v1756_v33 = vadd.f32 %v456_v32, %v1694_v55  ;;  %779 = vmatmul.mubr.f32.gmra.mrb[8].mxu1 %v631_v29  ;;  %v633_v42 = vmul.f32 %v601_v26, %v505_v0 }
 0x187   : > { %v1225_v34 = vpop.eup %1224  ;;  %v545_v35 = vmul.f32 0.70710677, %v1752_v21  ;;  %v634_v37 = vmul.f32 %v602_v31, %v506_v30  ;;  %v513_v28 = vmul.f32 0.5, %v1752_v21 }
 0x188   : > { %v1227_v38 = vpop.eup %1226  ;;  %v603_v39 = vadd.f32 1.0, %v1225_v34  ;;  %v546_v40 = vmul.f32 0.70710677, %v1756_v33  ;;  %v460_v41 = vpop.f32.mrb[20].mxu0  ;;  %v514_v25 = vmul.f32 0.5, %v1756_v33 }
 0x189   : > { %v604_v44 = vadd.f32 1.0, %v1227_v38  ;;  %1236 = verf.f32 %v545_v35  ;;  %v1762_v36 = vadd.f32 %v460_v41, %v1692_v54  ;;  %v462_v45 = vpop.f32.mrb[21].mxu0  ;;  %783 = vmatprep.mubr.f32.mxu1 %v634_v37 }
 0x18a   : > { %1238 = verf.f32 %v546_v40  ;;  %v1766_v47 = vadd.f32 %v462_v45, %v1694_v55  ;;  %784 = vmatmul.mubr.f32.gmra.mrb[10].mxu1 %v633_v42  ;;  %v635_v58 = vmul.f32 %v603_v39, %v507_v46 }
 0x18b   : > { %v1229_v48 = vpop.eup %1228  ;;  %v547_v49 = vmul.f32 0.70710677, %v1762_v36  ;;  %v636_v51 = vmul.f32 %v604_v44, %v508_v43  ;;  %v515_v41 = vmul.f32 0.5, %v1762_v36 }
 0x18c   : > { %v1231_v52 = vpop.eup %1230  ;;  %v605_v53 = vadd.f32 1.0, %v1229_v48  ;;  %v548_v56 = vmul.f32 0.70710677, %v1766_v47  ;;  %v466_v57 = vpop.f32.mrb[22].mxu0  ;;  %v516_v38 = vmul.f32 0.5, %v1766_v47 }
 0x18d   : > { %v606_v60 = vadd.f32 1.0, %v1231_v52  ;;  %1240 = verf.f32 %v547_v49  ;;  %v1772_v50 = vadd.f32 %v466_v57, %v1692_v54  ;;  %v468_v61 = vpop.f32.mrb[23].mxu0  ;;  %788 = vmatprep.mubr.f32.mxu1 %v636_v51 }
 0x18e   : > { %1242 = verf.f32 %v548_v56  ;;  %v1776_v63 = vadd.f32 %v468_v61, %v1694_v55  ;;  %789 = vmatmul.mubr.f32.gmra.mrb[12].mxu1 %v635_v58  ;;  %v637_v9 = vmul.f32 %v605_v53, %v509_v62 }
 0x18f   : > { %v1233_v1 = vpop.eup %1232  ;;  %v549_v2 = vmul.f32 0.70710677, %v1772_v50  ;;  %v638_v4 = vmul.f32 %v606_v60, %v510_v59  ;;  %v517_v36 = vmul.f32 0.5, %v1772_v50 }
 0x190   : > { %v1235_v5 = vpop.eup %1234  ;;  %v607_v6 = vadd.f32 1.0, %v1233_v1  ;;  %v550_v7 = vmul.f32 0.70710677, %v1776_v63  ;;  %v472_v8 = vpop.f32.mrb[24].mxu0  ;;  %v518_v52 = vmul.f32 0.5, %v1776_v63 }
 0x191   : > { %v608_v11 = vadd.f32 1.0, %v1235_v5  ;;  %1244 = verf.f32 %v549_v2  ;;  %v1782_v3 = vadd.f32 %v472_v8, %v1692_v54  ;;  %v474_v13 = vpop.f32.mrb[25].mxu0  ;;  %793 = vmatprep.mubr.f32.mxu1 %v638_v4 }
 0x192   : > { %1246 = verf.f32 %v550_v7  ;;  %v1786_v15 = vadd.f32 %v474_v13, %v1694_v55  ;;  %794 = vmatmul.mubr.f32.gmra.mrb[14].mxu1 %v637_v9  ;;  %v639_v24 = vmul.f32 %v607_v6, %v511_v14 }
 0x193   : > { %v1237_v16 = vpop.eup %1236  ;;  %v551_v17 = vmul.f32 0.70710677, %v1782_v3  ;;  %v640_v18 = vmul.f32 %v608_v11, %v512_v10 }
 0x194   : > { %v1239_v19 = vpop.eup %1238  ;;  %v609_v20 = vadd.f32 1.0, %v1237_v16  ;;  %v552_v22 = vmul.f32 0.70710677, %v1786_v15  ;;  %v478_v23 = vpop.f32.mrb[26].mxu0  ;;  %v520_v63 = vmul.f32 0.5, %v1786_v15 }
 0x195   : > { %v610_v26 = vadd.f32 1.0, %v1239_v19  ;;  %1248 = verf.f32 %v551_v17  ;;  %v1792_v12 = vadd.f32 %v478_v23, %v1692_v54  ;;  %v480_v27 = vpop.f32.mrb[27].mxu0  ;;  %798 = vmatprep.mubr.f32.mxu1 %v640_v18 }
 0x196   : > { %1250 = verf.f32 %v552_v22  ;;  %v481_v29 = vadd.f32 %v480_v27, %v1694_v55  ;;  %799 = vmatmul.mubr.f32.gmra.mrb[16].mxu1 %v639_v24  ;;  %v641_v37 = vmul.f32 %v609_v20, %v513_v28 }
 0x197   : > { %v1241_v30 = vpop.eup %1240  ;;  %v553_v31 = vmul.f32 0.70710677, %v1792_v12  ;;  %v642_v32 = vmul.f32 %v610_v26, %v514_v25  ;;  %v521_v11 = vmul.f32 0.5, %v1792_v12 }
 0x198   : > { %v1243_v0 = vpop.eup %1242  ;;  %v611_v34 = vadd.f32 1.0, %v1241_v30  ;;  %v554_v33 = vmul.f32 0.70710677, %v481_v29  ;;  %v484_v35 = vpop.f32.mrb[28].mxu0  ;;  %v522_v9 = vmul.f32 0.5, %v481_v29 }
 0x199   : > { %v612_v39 = vadd.f32 1.0, %v1243_v0  ;;  %1252 = verf.f32 %v553_v31  ;;  %v485_v40 = vadd.f32 %v484_v35, %v1692_v54  ;;  %v486_v21 = vpop.f32.mrb[29].mxu0  ;;  %803 = vmatprep.mubr.f32.mxu1 %v642_v32  ;;  %v1811_v31 = vld [vmem:[%s1904_s4] ss:$0 sm:$0xff] }
 0x19a   : > { %1254 = verf.f32 %v554_v33  ;;  %v487_v42 = vadd.f32 %v486_v21, %v1694_v55  ;;  %804 = vmatmul.mubr.f32.gmra.mrb[18].mxu1 %v641_v37  ;;  %v643_v47 = vmul.f32 %v611_v34, %v515_v41 }
 0x19b   : > { %v1245_v43 = vpop.eup %1244  ;;  %v555_v44 = vmul.f32 0.70710677, %v485_v40  ;;  %v644_v45 = vmul.f32 %v612_v39, %v516_v38  ;;  %v523_v19 = vmul.f32 0.5, %v485_v40 }
 0x19c   : > { %v1247_v46 = vpop.eup %1246  ;;  %v613_v48 = vadd.f32 1.0, %v1245_v43  ;;  %v556_v49 = vmul.f32 0.70710677, %v487_v42  ;;  %v490_v51 = vpop.f32.mrb[30].mxu0  ;;  %v524_v18 = vmul.f32 0.5, %v487_v42 }
 0x19d   : > { %v614_v53 = vadd.f32 1.0, %v1247_v46  ;;  %1256 = verf.f32 %v555_v44  ;;  %v491_v56 = vadd.f32 %v490_v51, %v1692_v54  ;;  %v492_v57 = vpop.f32.mrb[31].mxu0  ;;  %808 = vmatprep.mubr.f32.mxu1 %v644_v45  ;;  %v519_v54 = vmul.f32 0.5, %v1782_v3 }
 0x19e   : > { %1258 = verf.f32 %v556_v49  ;;  %v493_v58 = vadd.f32 %v492_v57, %v1694_v55  ;;  %809 = vmatmul.mubr.f32.gmra.mrb[20].mxu1 %v643_v47  ;;  %v645_v4 = vmul.f32 %v613_v48, %v517_v36 }
 0x19f   : > { %v1249_v59 = vpop.eup %1248  ;;  %v557_v60 = vmul.f32 0.70710677, %v491_v56  ;;  %v646_v61 = vmul.f32 %v614_v53, %v518_v52  ;;  %v525_v12 = vmul.f32 0.5, %v491_v56 }
 0x1a0   : > { %v1251_v62 = vpop.eup %1250  ;;  %v615_v1 = vadd.f32 1.0, %v1249_v59  ;;  %v558_v2 = vmul.f32 0.70710677, %v493_v58  ;;  %v526_v26 = vmul.f32 0.5, %v493_v58 }
 0x1a1   : > { %v616_v5 = vadd.f32 1.0, %v1251_v62  ;;  %1260 = verf.f32 %v557_v60  ;;  %813 = vmatprep.mubr.f32.mxu1 %v646_v61 }
 0x1a2   : > { %1262 = verf.f32 %v558_v2  ;;  %814 = vmatmul.mubr.f32.gmra.mrb[22].mxu1 %v645_v4  ;;  %v647_v8 = vmul.f32 %v615_v1, %v519_v54 }
 0x1a3   : > { %v1253_v50 = vpop.eup %1252  ;;  %v648_v6 = vmul.f32 %v616_v5, %v520_v63 }
 0x1a4   : > { %v1255_v55 = vpop.eup %1254  ;;  %v617_v7 = vadd.f32 1.0, %v1253_v50 }
 0x1a5   : > { %v618_v10 = vadd.f32 1.0, %v1255_v55  ;;  %818 = vmatprep.mubr.f32.mxu1 %v648_v6 }
 0x1a6   : > { %819 = vmatmul.mubr.f32.gmra.mrb[24].mxu1 %v647_v8  ;;  %v649_v17 = vmul.f32 %v617_v7, %v521_v11 }
 0x1a7   : > { %v1257_v13 = vpop.eup %1256  ;;  %v650_v14 = vmul.f32 %v618_v10, %v522_v9 }
 0x1a8   : > { %v1259_v15 = vpop.eup %1258  ;;  %v619_v16 = vadd.f32 1.0, %v1257_v13 }
 0x1a9   : > { %v620_v3 = vadd.f32 1.0, %v1259_v15  ;;  %823 = vmatprep.mubr.f32.mxu1 %v650_v14 }
 0x1aa   : > { %824 = vmatmul.mubr.f32.gmra.mrb[26].mxu1 %v649_v17  ;;  %v651_v25 = vmul.f32 %v619_v16, %v523_v19 }
 0x1ab   : > { %v1261_v20 = vpop.eup %1260  ;;  %v652_v22 = vmul.f32 %v620_v3, %v524_v18 }
 0x1ac   : > { %v1263_v23 = vpop.eup %1262  ;;  %v621_v24 = vadd.f32 1.0, %v1261_v20 }
 0x1ad   : > { %v622_v27 = vadd.f32 1.0, %v1263_v23  ;;  %828 = vmatprep.mubr.f32.mxu1 %v652_v22 }
 0x1ae   : > { %829 = vmatmul.mubr.f32.gmra.mrb[28].mxu1 %v651_v25  ;;  %v653_v29 = vmul.f32 %v621_v24, %v525_v12 }
 0x1af   : > { %v654_v28 = vmul.f32 %v622_v27, %v526_v26 }
 0x1b1   : > { %833 = vmatprep.mubr.f32.mxu1 %v654_v28 }
 0x1b2   : > { %834 = vmatmul.mubr.f32.gmra.mrb[30].mxu1 %v653_v29 }
 0x249   : > { %v1014_v30 = vpop.f32.mrb[0].mxu1 }
 0x24a   : > { %v1015_v32 = vpop.f32.mrb[1].mxu1 }
 0x24b   : > { %v1016_v0 = vadd.f32 %v1015_v32, %v1014_v30 }
 0x24d   : > { %v761_v34 = vadd.f32 %v1016_v0, %v1811_v31  ;;  %v1017_v33 = vpop.f32.mrb[2].mxu1 }
 0x24e   : > { %v1018_v35 = vpop.f32.mrb[3].mxu1 }
 0x24f   : > { %839 = vst [vmem:[%s1816_s10] sm:$0xff] %v761_v34  ;;  %v1019_v37 = vadd.f32 %v1018_v35, %v1017_v33 }
 0x251   : > { %v766_v38 = vadd.f32 %v1019_v37, %v1811_v31  ;;  %v1020_v39 = vpop.f32.mrb[4].mxu1 }
 0x252   : > { %v1021_v40 = vpop.f32.mrb[5].mxu1 }
 0x253   : > { %840 = vst [vmem:[%s1816_s10 + $0x8] sm:$0xff] %v766_v38  ;;  %v1022_v21 = vadd.f32 %v1021_v40, %v1020_v39 }
 0x255   : > { %v771_v41 = vadd.f32 %v1022_v21, %v1811_v31  ;;  %v1023_v42 = vpop.f32.mrb[6].mxu1 }
 0x256   : > { %v1024_v43 = vpop.f32.mrb[7].mxu1 }
 0x257   : > { %841 = vst [vmem:[%s1816_s10 + $0x10] sm:$0xff] %v771_v41  ;;  %v1025_v44 = vadd.f32 %v1024_v43, %v1023_v42 }
 0x259   : > { %v776_v45 = vadd.f32 %v1025_v44, %v1811_v31  ;;  %v1026_v46 = vpop.f32.mrb[8].mxu1 }
 0x25a   : > { %v1027_v48 = vpop.f32.mrb[9].mxu1 }
 0x25b   : > { %842 = vst [vmem:[%s1816_s10 + $0x18] sm:$0xff] %v776_v45  ;;  %v1028_v49 = vadd.f32 %v1027_v48, %v1026_v46 }
 0x25d   : > { %v781_v51 = vadd.f32 %v1028_v49, %v1811_v31  ;;  %v1029_v47 = vpop.f32.mrb[10].mxu1 }
 0x25e   : > { %v1030_v52 = vpop.f32.mrb[11].mxu1 }
 0x25f   : > { %843 = vst [vmem:[%s1816_s10 + $0x20] sm:$0xff] %v781_v51  ;;  %v1031_v53 = vadd.f32 %v1030_v52, %v1029_v47 }
 0x261   : > { %v786_v56 = vadd.f32 %v1031_v53, %v1811_v31  ;;  %v1032_v57 = vpop.f32.mrb[12].mxu1 }
 0x262   : > { %v1033_v36 = vpop.f32.mrb[13].mxu1 }
 0x263   : > { %844 = vst [vmem:[%s1816_s10 + $0x28] sm:$0xff] %v786_v56  ;;  %v1034_v58 = vadd.f32 %v1033_v36, %v1032_v57 }
 0x265   : > { %v791_v59 = vadd.f32 %v1034_v58, %v1811_v31  ;;  %v1035_v60 = vpop.f32.mrb[14].mxu1 }
 0x266   : > { %v1036_v61 = vpop.f32.mrb[15].mxu1 }
 0x267   : > { %845 = vst [vmem:[%s1816_s10 + $0x30] sm:$0xff] %v791_v59  ;;  %v1037_v62 = vadd.f32 %v1036_v61, %v1035_v60 }
 0x269   : > { %v796_v1 = vadd.f32 %v1037_v62, %v1811_v31  ;;  %v1038_v2 = vpop.f32.mrb[16].mxu1 }
 0x26a   : > { %v1039_v4 = vpop.f32.mrb[17].mxu1 }
 0x26b   : > { %846 = vst [vmem:[%s1816_s10 + $0x38] sm:$0xff] %v796_v1  ;;  %v1040_v63 = vadd.f32 %v1039_v4, %v1038_v2 }
 0x26d   : > { %v801_v5 = vadd.f32 %v1040_v63, %v1811_v31  ;;  %v1041_v54 = vpop.f32.mrb[18].mxu1 }
 0x26e   : > { %v1042_v50 = vpop.f32.mrb[19].mxu1 }
 0x26f   : > { %847 = vst [vmem:[%s1816_s10 + $0x40] sm:$0xff] %v801_v5  ;;  %v1043_v6 = vadd.f32 %v1042_v50, %v1041_v54 }
 0x271   : > { %v806_v55 = vadd.f32 %v1043_v6, %v1811_v31  ;;  %v1044_v7 = vpop.f32.mrb[20].mxu1 }
 0x272   : > { %v1045_v8 = vpop.f32.mrb[21].mxu1 }
 0x273   : > { %848 = vst [vmem:[%s1816_s10 + $0x48] sm:$0xff] %v806_v55  ;;  %v1046_v9 = vadd.f32 %v1045_v8, %v1044_v7 }
 0x275   : > { %v811_v10 = vadd.f32 %v1046_v9, %v1811_v31  ;;  %v1047_v11 = vpop.f32.mrb[22].mxu1 }
 0x276   : > { %v1048_v13 = vpop.f32.mrb[23].mxu1 }
 0x277   : > { %849 = vst [vmem:[%s1816_s10 + $0x50] sm:$0xff] %v811_v10  ;;  %v1049_v14 = vadd.f32 %v1048_v13, %v1047_v11 }
 0x279   : > { %v816_v15 = vadd.f32 %v1049_v14, %v1811_v31  ;;  %v1050_v16 = vpop.f32.mrb[24].mxu1 }
 0x27a   : > { %v1051_v17 = vpop.f32.mrb[25].mxu1 }
 0x27b   : > { %850 = vst [vmem:[%s1816_s10 + $0x58] sm:$0xff] %v816_v15  ;;  %v1052_v18 = vadd.f32 %v1051_v17, %v1050_v16 }
 0x27d   : > { %v821_v3 = vadd.f32 %v1052_v18, %v1811_v31  ;;  %v1053_v19 = vpop.f32.mrb[26].mxu1 }
 0x27e   : > { %v1054_v20 = vpop.f32.mrb[27].mxu1 }
 0x27f   : > { %851 = vst [vmem:[%s1816_s10 + $0x60] sm:$0xff] %v821_v3  ;;  %v1055_v22 = vadd.f32 %v1054_v20, %v1053_v19 }
 0x281   : > { %v826_v23 = vadd.f32 %v1055_v22, %v1811_v31  ;;  %v1056_v24 = vpop.f32.mrb[28].mxu1 }
 0x282   : > { %v1057_v25 = vpop.f32.mrb[29].mxu1 }
 0x283   : > { %852 = vst [vmem:[%s1816_s10 + $0x68] sm:$0xff] %v826_v23  ;;  %v1058_v26 = vadd.f32 %v1057_v25, %v1056_v24 }
 0x285   : > { %v831_v27 = vadd.f32 %v1058_v26, %v1811_v31  ;;  %v1059_v12 = vpop.f32.mrb[30].mxu1 }
 0x286   : > { %v1060_v28 = vpop.f32.mrb[31].mxu1 }
 0x287   : > { %853 = vst [vmem:[%s1816_s10 + $0x70] sm:$0xff] %v831_v27  ;;  %v1061_v29 = vadd.f32 %v1060_v28, %v1059_v12 }
 0x289   : > { %v836_v30 = vadd.f32 %v1061_v29, %v1811_v31 }
 0x28b   : > { %854 = vst [vmem:[%s1816_s10 + $0x78] sm:$0xff] %v836_v30 }
 0x28c   : > { %1363 = shalt.err (!%p1360_p2)
}
 0x28d   : > { %s1364_s14 = scalar_lea.hbm %s1852_s11, 2048  ;;  %s1368_s12 = scalar_lea.hbm %s1905_s5, 4096 }
 0x28e   : > { %p1365_p13 = scmp.ne.s32.totalorder %s1852_s11, %s1364_s14  ;;  %p1369_p4 = scmp.lt.u32.totalorder %s1852_s11, %s1905_s5 }
 0x28f   : > { %p1370_p7 = scmp.lt.u32.totalorder %s1368_s12, %s1364_s14  ;;  %p1372_p11 = scmp.lt.u32.totalorder %s1364_s14, %s1852_s11 }
 0x290   : > { %p1366_p6 = pnand %p1365_p13, %p1919_p0 }
 0x291   : > { %p1371_p8 = por %p1370_p7, %p1369_p4 }
 0x292   : > { %p1367_p10 = pneg %p1366_p6 }
 0x293   : > { %p1373_p1 = por %p1372_p11, %p1371_p8 }
 0x295   : > { %p1374_p3 = pnand %p1373_p1, %p1367_p10 }
 0x297   : > { %1377 = shalt.err (!%p1374_p3)
}
 0x298   : > { %s1431_s28 = smov 128   ;;  %s1432_s9 = smov 8  }
 0x299   : > { %1136 = dma.vmem_to_hbm [thread:$0]  (%p1919_p0), %s1854_s15, 2048, %s1852_s11, %s856_s23, %s1431_s28, %s1431_s28, %s1432_s9  }
 0x29a PF: > { %s884_s30 = sand.u32 1, %s1408_s18   ;;  %p1920_p5 = scmp.ne.s32.totalorder %s1910_s25, 0 }
 0x29b   : > { %p1921_p9 = scmp.ge.s32.totalorder %s1420_s21, 2  ;;  %s885_s7 = scalar_lea.sflag [#allocation4], %s884_s30 }
 0x29d   : > { %p1150_p12 = pnand %p1921_p9, %p1920_p5 }
 0x29f   : > { %1403 = dma.done.wait (!%p1150_p12), %s885_s7, 2048  }
 0x2a0   : > { %1405 = vsyncadd (!%p1150_p12), %s885_s7, 4294965248  ;;  %p19_p2 = scmp.ge.s32.totalorder %s1576_s16, 4   ;;  %s1922_s18 = smov %s1412_s19 }
 0x2a1   : > { %s1923_s19 = smov %s1416_s20  ;;  %s1924_s20 = smov %s1585_s27 }
 0x2a2   : > { %s1925_s21 = smov %s1576_s16  ;;  %21 = sbr.rel (!%p19_p2) target bundleno = 6 (0x6), region = 93 }
 0x2a9   :  { %890 = vsyncpa [#allocation3], 1 }
 0x2aa   :  { %892 = vsyncpa [#allocation3 + $0x1], 1 }
 0x2ab   :  { %893 = vsyncpa [#allocation6], 1 }
 0x2ac   :  { %894 = vsyncpa [#allocation4], 1 }
 0x2ad   :  { %896 = vsyncpa [#allocation4 + $0x1], 1 }

</bundles_post_ra>
